<compile_context>
chip_gen: v5e
topology: v5e:2x2
jax: 0.10.0
libtpu: 0.0.40
codegen_flags: <defaults>
</compile_context>

<pallas_src>
import functools

import jax
import jax.numpy as jnp
from jax import lax
from jax.experimental import pallas as pl
from jax.experimental.pallas import tpu as pltpu

LANE = 128          # TPU vreg lane width; 2H and the head columns are padded to this
SUBLANE_BF16 = 16   # bf16 sublane packing multiple used for the query-row padding


def bidaf_kernel(q_ref, c_ref, wq_ref, wc_ref, wall_ref, masks_ref, vecs_ref,
                 out_ref, *, lq: int):
    """One batch element per grid step. All operands VMEM-resident."""
    f32, bf16 = jnp.float32, jnp.bfloat16
    _, lq_pad, _ = q_ref.shape          # (1, query len padded to 16, E)  bf16
    _, lc, _ = c_ref.shape              # (1, c_len, E)                   bf16

    # Packed small operands (one (8,128) f32 slab):
    #   rows 0..7 = bq, bc, wsq, wscq, wsc, bout(lanes 0..1), one-hot lane0, one-hot lane1
    bq   = vecs_ref[0:1, :]
    bc   = vecs_ref[1:2, :]
    wsq  = vecs_ref[2:3, :]
    wscq = vecs_ref[3:4, :]
    wsc  = vecs_ref[4:5, :]
    bout = vecs_ref[5:6, :]
    e0   = vecs_ref[6:7, :]
    e1   = vecs_ref[7:8, :]

    # --- Word2Vec: BERT=True -> inputs are already dense embeddings (identity) ---
    # TODO(synk): no vocab-lookup path; callers must supply BERT embeddings of size E.

    # --- ContextualEmbedding(q) / ContextualEmbedding(c): affine E -> 2H + tanh ---
    # TODO(synk): ContextualEmbedding source (likely a BiLSTM) not provided; affine+tanh stand-in.
    q2 = jnp.tanh(jnp.dot(q_ref[0], wq_ref[...], preferred_element_type=f32) + bq)  # (lq_pad, Hp)
    c2 = jnp.tanh(jnp.dot(c_ref[0], wc_ref[...], preferred_element_type=f32) + bc)  # (lc, Hp)
    q2b = q2.astype(bf16)
    c2b = c2.astype(bf16)   # single bf16 copy of the context features, reused below

    # --- E2E similarity: S[i,j] = wsc.c_i + wsq.q_j + wscq.(c_i*q_j) ---------------
    # wsq.q_j folded into the MXU contraction; wsc.c_i as VPU multiply + lane reduce.
    cw = (c2 * wscq + wsq).astype(bf16)                                   # (lc, Hp)
    S = lax.dot_general(cw, q2b, (((1,), (1,)), ((), ())),
                        preferred_element_type=f32)                       # (lc, lq_pad)
    S = S + jnp.sum(c2 * wsc, axis=-1, keepdims=True)                     # + wsc.c_i
    # mask padded query positions (their rows are tanh(bq) != 0) before any softmax/max
    jmask = lax.broadcasted_iota(jnp.int32, (1, lq_pad), 1) < lq
    S = jnp.where(jmask, S, f32(-1e30))

    # context-to-query attention: softmax over (masked) query positions
    s_max = jnp.max(S, axis=-1, keepdims=True)                            # (lc, 1)
    p = jnp.exp(S - s_max)
    a = p * pl.reciprocal(jnp.sum(p, axis=-1, keepdims=True), approx=True)
    c2q = jnp.dot(a.astype(bf16), q2b, preferred_element_type=f32)        # (lc, Hp)

    # query-to-context attention: softmax over context positions of the row max
    m = s_max - jnp.max(s_max, axis=0, keepdims=True)                     # (lc, 1)
    e = jnp.exp(m)
    bgate = e * pl.reciprocal(jnp.sum(e, axis=0, keepdims=True), approx=True)
    q2c = jnp.sum(bgate * c2, axis=0, keepdims=True)                      # (1, Hp)

    # --- G = [c ; c2q ; c*c2q ; c*q2c] -> flattened Linear(c_len*8H, 2) -------------
    # Four accumulating K=128 dots against the four (Hp, LANE) slabs of the
    # pre-flattened head weight (no lane-dim concat, no K=512 slab).
    g2b = c2q.astype(bf16)
    g3b = (c2 * c2q).astype(bf16)
    g4b = (c2 * q2c).astype(bf16)          # implicit broadcast of q2c, no broadcast_to
    t = (jnp.dot(c2b, wall_ref[0], preferred_element_type=f32)
         + jnp.dot(g2b, wall_ref[1], preferred_element_type=f32)
         + jnp.dot(g3b, wall_ref[2], preferred_element_type=f32)
         + jnp.dot(g4b, wall_ref[3], preferred_element_type=f32))          # (lc, LANE)

    # Column (k*c_len + i) of wall holds the class-k weights of context position i;
    # host-precomputed one-hot masks select the i==position diagonal per class.
    s0 = jnp.sum(jnp.sum(t * masks_ref[0], axis=1, keepdims=True), axis=0, keepdims=True)
    s1 = jnp.sum(jnp.sum(t * masks_ref[1], axis=1, keepdims=True), axis=0, keepdims=True)
    out_ref[0] = (s0 * e0 + s1 * e1 + bout).astype(out_ref.dtype)          # (1, LANE)


def init_params(key, embed_size, hidden_size, c_len):
    """Module-style parameters (unpadded, f32), mirroring the PyTorch layout."""
    h2 = 2 * hidden_size
    ks = jax.random.split(key, 11)
    s = 0.1
    return dict(
        Wq=s * jax.random.normal(ks[0], (embed_size, h2), jnp.float32),
        bq=s * jax.random.normal(ks[1], (1, h2), jnp.float32),
        Wc=s * jax.random.normal(ks[2], (embed_size, h2), jnp.float32),
        bc=s * jax.random.normal(ks[3], (1, h2), jnp.float32),
        wsc=s * jax.random.normal(ks[4], (1, h2), jnp.float32),
        wsq=s * jax.random.normal(ks[5], (1, h2), jnp.float32),
        wscq=s * jax.random.normal(ks[6], (1, h2), jnp.float32),
        # Flattened output Linear(c_len*8H, 2) pre-partitioned into the four G
        # components (order [c; c2q; c*c2q; c*q2c]), each stored as (2, c_len, 2H).
        W1=s * jax.random.normal(ks[7], (2, c_len, h2), jnp.float32),
        W2=s * jax.random.normal(ks[8], (2, c_len, h2), jnp.float32),
        W3=s * jax.random.normal(ks[9], (2, c_len, h2), jnp.float32),
        W4=s * jax.random.normal(ks[10], (2, c_len, h2), jnp.float32),
        bout=jnp.zeros((1, 2), jnp.float32),
    )


def prepare_params(params, hidden_size, c_len):
    """One-time host-side layout plumbing: pad the 2H feature dim to 128 lanes, flatten
    the output head into a (4, 128, 128) bf16 slab, precompute the diagonal-select
    masks, pack all tiny vectors into one (8,128) f32 slab, pre-cast MXU weights to bf16."""
    h2 = 2 * hidden_size
    assert h2 <= LANE and 2 * c_len <= LANE, "toy sizes must fit one lane group"
    bf16 = jnp.bfloat16

    def pad_cols(w):
        out = jnp.zeros((w.shape[0], LANE), jnp.float32)
        return out.at[:, :h2].set(w)

    # output head: wall[comp, h, k*c_len + i] = W_comp[k, i, h]
    wall = jnp.zeros((4, LANE, LANE), jnp.float32)
    for comp, w in enumerate((params['W1'], params['W2'], params['W3'], params['W4'])):
        slab = jnp.transpose(w, (2, 0, 1)).reshape(h2, 2 * c_len)
        wall = wall.at[comp, :h2, :2 * c_len].set(slab)

    # diagonal-select masks: masks[k, i, k*c_len + i] = 1
    masks = jnp.zeros((2, c_len, LANE), jnp.float32)
    ii = jnp.arange(c_len)
    masks = masks.at[0, ii, ii].set(1.0)
    masks = masks.at[1, ii, c_len + ii].set(1.0)

    # packed tiny operands: bq, bc, wsq, wscq, wsc, bout, output one-hot lanes 0/1
    vecs = jnp.zeros((8, LANE), jnp.float32)
    vecs = vecs.at[0, :h2].set(params['bq'][0])
    vecs = vecs.at[1, :h2].set(params['bc'][0])
    vecs = vecs.at[2, :h2].set(params['wsq'][0])
    vecs = vecs.at[3, :h2].set(params['wscq'][0])
    vecs = vecs.at[4, :h2].set(params['wsc'][0])
    vecs = vecs.at[5, :2].set(params['bout'][0])
    vecs = vecs.at[6, 0].set(1.0)
    vecs = vecs.at[7, 1].set(1.0)

    return dict(
        wq=pad_cols(params['Wq']).astype(bf16),
        wc=pad_cols(params['Wc']).astype(bf16),
        wall=wall.astype(bf16),
        masks=masks,
        vecs=vecs,
    )


def bidaf_forward(q_emb, c_emb, prepped):
    B, Lq, E = q_emb.shape
    _, Lc, Ec = c_emb.shape
    assert Ec == E
    bf16 = jnp.bfloat16
    lq_pad = ((Lq + SUBLANE_BF16 - 1) // SUBLANE_BF16) * SUBLANE_BF16
    # bf16 host-side cast; only the query length is padded (bf16 sublane multiple),
    # the embedding dim ships unpadded.
    q_p = jnp.zeros((B, lq_pad, E), bf16).at[:, :Lq, :].set(q_emb.astype(bf16))
    c_p = c_emb.astype(bf16)

    out = pl.pallas_call(
        functools.partial(bidaf_kernel, lq=Lq),
        out_shape=jax.ShapeDtypeStruct((B, 1, LANE), jnp.float32),
        grid=(B,),
        in_specs=[
            pl.BlockSpec((1, lq_pad, E), lambda b: (b, 0, 0)),
            pl.BlockSpec((1, Lc, E), lambda b: (b, 0, 0)),
            pl.BlockSpec((E, LANE), lambda b: (0, 0)),
            pl.BlockSpec((E, LANE), lambda b: (0, 0)),
            pl.BlockSpec((4, LANE, LANE), lambda b: (0, 0, 0)),
            pl.BlockSpec((2, Lc, LANE), lambda b: (0, 0, 0)),
            pl.BlockSpec((8, LANE), lambda b: (0, 0)),
        ],
        out_specs=pl.BlockSpec((1, 1, LANE), lambda b: (b, 0, 0)),
        compiler_params=pltpu.CompilerParams(dimension_semantics=("parallel",)),
        # TODO(synk): at real BiDAF sizes, re-budget the per-step working set for v7x's
        # 64 MiB VMEM / v5e's 16 MiB scoped default and set vmem_limit_bytes explicitly.
    )(q_p, c_p, prepped['wq'], prepped['wc'], prepped['wall'],
      prepped['masks'], prepped['vecs'])
    return out.reshape(B, LANE)[:, :2]


if __name__ == "__main__":
    key = jax.random.PRNGKey(0)
    B, Lq, Lc, E, H = 2, 8, 8, 32, 32   # batch, query len, context len (c_len), embed, hidden
    kq, kc, kp = jax.random.split(key, 3)
    # BERT=True -> q, c arrive as dense embeddings of size embed_size
    q = jax.random.normal(kq, (B, Lq, E), jnp.float32)
    c = jax.random.normal(kc, (B, Lc, E), jnp.float32)
    params = init_params(kp, E, H, Lc)
    prepped = prepare_params(params, H, Lc)

    out = jax.block_until_ready(bidaf_forward(q, c, prepped))
    assert out.shape == (B, 2) and out.dtype == jnp.float32
    assert bool(jnp.all(jnp.isfinite(out)))
    print("KERNEL_OK")
</pallas_src>

<mosaic_0001>
module attributes {stable_mosaic.version = 11 : i64} {
  func.func @bidaf_kernel(%arg0: i32, %arg1: memref<1x16x32xbf16, #tpu.memory_space<vmem>>, %arg2: memref<1x8x32xbf16, #tpu.memory_space<vmem>>, %arg3: memref<32x128xbf16, #tpu.memory_space<vmem>>, %arg4: memref<32x128xbf16, #tpu.memory_space<vmem>>, %arg5: memref<4x128x128xbf16, #tpu.memory_space<vmem>>, %arg6: memref<2x8x128xf32, #tpu.memory_space<vmem>>, %arg7: memref<8x128xf32, #tpu.memory_space<vmem>>, %arg8: memref<1x1x128xf32, #tpu.memory_space<vmem>>) attributes {dimension_semantics = [#tpu.dimension_semantics<parallel>], iteration_bounds = array<i64: 2>, scalar_prefetch = 0 : i64, scratch_operands = 0 : i64, tpu.core_type = #tpu.core_type<tc>, window_params = [{transform_indices = @transform_0, window_bounds = array<i64: 1, 16, 32>}, {transform_indices = @transform_1, window_bounds = array<i64: 1, 8, 32>}, {pipeline_mode = #tpu.pipeline_mode<synchronous>, transform_indices = @transform_2, window_bounds = array<i64: 32, 128>}, {pipeline_mode = #tpu.pipeline_mode<synchronous>, transform_indices = @transform_3, window_bounds = array<i64: 32, 128>}, {pipeline_mode = #tpu.pipeline_mode<synchronous>, transform_indices = @transform_4, window_bounds = array<i64: 4, 128, 128>}, {pipeline_mode = #tpu.pipeline_mode<synchronous>, transform_indices = @transform_5, window_bounds = array<i64: 2, 8, 128>}, {pipeline_mode = #tpu.pipeline_mode<synchronous>, transform_indices = @transform_6, window_bounds = array<i64: 8, 128>}, {transform_indices = @transform_7, window_bounds = array<i64: 1, 1, 128>}]} {
    %c0 = arith.constant 0 : index
    %c0_0 = arith.constant 0 : index
    %0 = vector.load %arg7[%c0, %c0_0] : memref<8x128xf32, #tpu.memory_space<vmem>>, vector<1x128xf32>
    %c1 = arith.constant 1 : index
    %c0_1 = arith.constant 0 : index
    %1 = vector.load %arg7[%c1, %c0_1] : memref<8x128xf32, #tpu.memory_space<vmem>>, vector<1x128xf32>
    %c2 = arith.constant 2 : index
    %c0_2 = arith.constant 0 : index
    %2 = vector.load %arg7[%c2, %c0_2] : memref<8x128xf32, #tpu.memory_space<vmem>>, vector<1x128xf32>
    %c3 = arith.constant 3 : index
    %c0_3 = arith.constant 0 : index
    %3 = vector.load %arg7[%c3, %c0_3] : memref<8x128xf32, #tpu.memory_space<vmem>>, vector<1x128xf32>
    %c4 = arith.constant 4 : index
    %c0_4 = arith.constant 0 : index
    %4 = vector.load %arg7[%c4, %c0_4] : memref<8x128xf32, #tpu.memory_space<vmem>>, vector<1x128xf32>
    %c5 = arith.constant 5 : index
    %c0_5 = arith.constant 0 : index
    %5 = vector.load %arg7[%c5, %c0_5] : memref<8x128xf32, #tpu.memory_space<vmem>>, vector<1x128xf32>
    %c6 = arith.constant 6 : index
    %c0_6 = arith.constant 0 : index
    %6 = vector.load %arg7[%c6, %c0_6] : memref<8x128xf32, #tpu.memory_space<vmem>>, vector<1x128xf32>
    %c7 = arith.constant 7 : index
    %c0_7 = arith.constant 0 : index
    %7 = vector.load %arg7[%c7, %c0_7] : memref<8x128xf32, #tpu.memory_space<vmem>>, vector<1x128xf32>
    %c0_8 = arith.constant 0 : index
    %c0_9 = arith.constant 0 : index
    %c0_10 = arith.constant 0 : index
    %8 = vector.load %arg1[%c0_8, %c0_9, %c0_10] : memref<1x16x32xbf16, #tpu.memory_space<vmem>>, vector<1x16x32xbf16>
    %9 = vector.shape_cast %8 : vector<1x16x32xbf16> to vector<16x32xbf16>
    %c0_11 = arith.constant 0 : index
    %c0_12 = arith.constant 0 : index
    %10 = vector.load %arg3[%c0_11, %c0_12] : memref<32x128xbf16, #tpu.memory_space<vmem>>, vector<32x128xbf16>
    %cst = arith.constant dense<0.000000e+00> : vector<16x128xf32>
    %11 = tpu.matmul %9, %10, %cst {dimension_numbers = #tpu.dot_dimension_numbers<[1], [0], [0], [1], [0, 0, 1, 1], [], []>} : vector<16x32xbf16>, vector<32x128xbf16>, vector<16x128xf32> -> vector<16x128xf32>
    %12 = vector.broadcast %0 : vector<1x128xf32> to vector<16x128xf32>
    %13 = arith.addf %11, %12 : vector<16x128xf32>
    %14 = math.tanh %13 : vector<16x128xf32>
    %c0_13 = arith.constant 0 : index
    %c0_14 = arith.constant 0 : index
    %c0_15 = arith.constant 0 : index
    %15 = vector.load %arg2[%c0_13, %c0_14, %c0_15] : memref<1x8x32xbf16, #tpu.memory_space<vmem>>, vector<1x8x32xbf16>
    %16 = vector.shape_cast %15 : vector<1x8x32xbf16> to vector<8x32xbf16>
    %c0_16 = arith.constant 0 : index
    %c0_17 = arith.constant 0 : index
    %17 = vector.load %arg4[%c0_16, %c0_17] : memref<32x128xbf16, #tpu.memory_space<vmem>>, vector<32x128xbf16>
    %cst_18 = arith.constant dense<0.000000e+00> : vector<8x128xf32>
    %18 = tpu.matmul %16, %17, %cst_18 {dimension_numbers = #tpu.dot_dimension_numbers<[1], [0], [0], [1], [0, 0, 1, 1], [], []>} : vector<8x32xbf16>, vector<32x128xbf16>, vector<8x128xf32> -> vector<8x128xf32>
    %19 = vector.broadcast %1 : vector<1x128xf32> to vector<8x128xf32>
    %20 = arith.addf %18, %19 : vector<8x128xf32>
    %21 = math.tanh %20 : vector<8x128xf32>
    %22 = arith.truncf %14 : vector<16x128xf32> to vector<16x128xbf16>
    %23 = arith.truncf %21 : vector<8x128xf32> to vector<8x128xbf16>
    %24 = vector.broadcast %3 : vector<1x128xf32> to vector<8x128xf32>
    %25 = arith.mulf %21, %24 : vector<8x128xf32>
    %26 = vector.broadcast %2 : vector<1x128xf32> to vector<8x128xf32>
    %27 = arith.addf %25, %26 : vector<8x128xf32>
    %28 = arith.truncf %27 : vector<8x128xf32> to vector<8x128xbf16>
    %cst_19 = arith.constant dense<0.000000e+00> : vector<8x16xf32>
    %29 = tpu.matmul %28, %22, %cst_19 {dimension_numbers = #tpu.dot_dimension_numbers<[1], [1], [0], [0], [0, 0, 1, 0], [], []>} : vector<8x128xbf16>, vector<16x128xbf16>, vector<8x16xf32> -> vector<8x16xf32>
    %30 = vector.broadcast %4 : vector<1x128xf32> to vector<8x128xf32>
    %31 = arith.mulf %21, %30 : vector<8x128xf32>
    %cst_20 = arith.constant dense<0.000000e+00> : vector<8xf32>
    %32 = vector.multi_reduction <add>, %31, %cst_20 [1] : vector<8x128xf32> to vector<8xf32>
    %33 = vector.shape_cast %32 : vector<8xf32> to vector<8x1xf32>
    %34 = vector.broadcast %33 : vector<8x1xf32> to vector<8x16xf32>
    %35 = arith.addf %29, %34 : vector<8x16xf32>
    %36 = tpu.iota {dimensions = array<i32: 1>} : vector<1x16xi32>
    %c8_i32 = arith.constant 8 : i32
    %37 = vector.broadcast %c8_i32 : i32 to vector<1x16xi32>
    %38 = arith.cmpi slt, %36, %37 : vector<1x16xi32>
    %cst_21 = arith.constant -1.000000e+30 : f32
    %39 = vector.shape_cast %38 : vector<1x16xi1> to vector<1x16xi1>
    %40 = vector.broadcast %39 : vector<1x16xi1> to vector<8x16xi1>
    %41 = vector.broadcast %cst_21 : f32 to vector<8x16xf32>
    %42 = arith.select %40, %35, %41 : vector<8x16xi1>, vector<8x16xf32>
    %cst_22 = arith.constant dense<0xFF800000> : vector<8xf32>
    %43 = vector.multi_reduction <maximumf>, %42, %cst_22 [1] : vector<8x16xf32> to vector<8xf32>
    %44 = vector.shape_cast %43 : vector<8xf32> to vector<8x1xf32>
    %45 = vector.broadcast %44 : vector<8x1xf32> to vector<8x16xf32>
    %46 = arith.subf %42, %45 : vector<8x16xf32>
    %47 = math.exp %46 : vector<8x16xf32>
    %cst_23 = arith.constant dense<0.000000e+00> : vector<8xf32>
    %48 = vector.multi_reduction <add>, %47, %cst_23 [1] : vector<8x16xf32> to vector<8xf32>
    %49 = vector.shape_cast %48 : vector<8xf32> to vector<8x1xf32>
    %50 = tpu.reciprocal %49 {approx = true} : vector<8x1xf32> -> vector<8x1xf32>
    %51 = vector.broadcast %50 : vector<8x1xf32> to vector<8x16xf32>
    %52 = arith.mulf %47, %51 : vector<8x16xf32>
    %53 = arith.truncf %52 : vector<8x16xf32> to vector<8x16xbf16>
    %cst_24 = arith.constant dense<0.000000e+00> : vector<8x128xf32>
    %54 = tpu.matmul %53, %22, %cst_24 {dimension_numbers = #tpu.dot_dimension_numbers<[1], [0], [0], [1], [0, 0, 1, 1], [], []>} : vector<8x16xbf16>, vector<16x128xbf16>, vector<8x128xf32> -> vector<8x128xf32>
    %cst_25 = arith.constant dense<0xFF800000> : vector<1xf32>
    %55 = vector.multi_reduction <maximumf>, %44, %cst_25 [0] : vector<8x1xf32> to vector<1xf32>
    %56 = vector.shape_cast %55 : vector<1xf32> to vector<1x1xf32>
    %57 = vector.broadcast %56 : vector<1x1xf32> to vector<8x1xf32>
    %58 = arith.subf %44, %57 : vector<8x1xf32>
    %59 = math.exp %58 : vector<8x1xf32>
    %cst_26 = arith.constant dense<0.000000e+00> : vector<1xf32>
    %60 = vector.multi_reduction <add>, %59, %cst_26 [0] : vector<8x1xf32> to vector<1xf32>
    %61 = vector.shape_cast %60 : vector<1xf32> to vector<1x1xf32>
    %62 = tpu.reciprocal %61 {approx = true} : vector<1x1xf32> -> vector<1x1xf32>
    %63 = vector.broadcast %62 : vector<1x1xf32> to vector<8x1xf32>
    %64 = arith.mulf %59, %63 : vector<8x1xf32>
    %65 = vector.broadcast %64 : vector<8x1xf32> to vector<8x128xf32>
    %66 = arith.mulf %65, %21 : vector<8x128xf32>
    %cst_27 = arith.constant dense<0.000000e+00> : vector<128xf32>
    %67 = vector.multi_reduction <add>, %66, %cst_27 [0] : vector<8x128xf32> to vector<128xf32>
    %68 = vector.shape_cast %67 : vector<128xf32> to vector<1x128xf32>
    %69 = arith.truncf %54 : vector<8x128xf32> to vector<8x128xbf16>
    %70 = arith.mulf %21, %54 : vector<8x128xf32>
    %71 = arith.truncf %70 : vector<8x128xf32> to vector<8x128xbf16>
    %72 = vector.broadcast %68 : vector<1x128xf32> to vector<8x128xf32>
    %73 = arith.mulf %21, %72 : vector<8x128xf32>
    %74 = arith.truncf %73 : vector<8x128xf32> to vector<8x128xbf16>
    %c0_28 = arith.constant 0 : index
    %c0_29 = arith.constant 0 : index
    %c0_30 = arith.constant 0 : index
    %75 = vector.load %arg5[%c0_28, %c0_29, %c0_30] : memref<4x128x128xbf16, #tpu.memory_space<vmem>>, vector<1x128x128xbf16>
    %76 = vector.shape_cast %75 : vector<1x128x128xbf16> to vector<128x128xbf16>
    %cst_31 = arith.constant dense<0.000000e+00> : vector<8x128xf32>
    %77 = tpu.matmul %23, %76, %cst_31 {dimension_numbers = #tpu.dot_dimension_numbers<[1], [0], [0], [1], [0, 0, 1, 1], [], []>} : vector<8x128xbf16>, vector<128x128xbf16>, vector<8x128xf32> -> vector<8x128xf32>
    %c1_32 = arith.constant 1 : index
    %c0_33 = arith.constant 0 : index
    %c0_34 = arith.constant 0 : index
    %78 = vector.load %arg5[%c1_32, %c0_33, %c0_34] : memref<4x128x128xbf16, #tpu.memory_space<vmem>>, vector<1x128x128xbf16>
    %79 = vector.shape_cast %78 : vector<1x128x128xbf16> to vector<128x128xbf16>
    %cst_35 = arith.constant dense<0.000000e+00> : vector<8x128xf32>
    %80 = tpu.matmul %69, %79, %cst_35 {dimension_numbers = #tpu.dot_dimension_numbers<[1], [0], [0], [1], [0, 0, 1, 1], [], []>} : vector<8x128xbf16>, vector<128x128xbf16>, vector<8x128xf32> -> vector<8x128xf32>
    %81 = arith.addf %77, %80 : vector<8x128xf32>
    %c2_36 = arith.constant 2 : index
    %c0_37 = arith.constant 0 : index
    %c0_38 = arith.constant 0 : index
    %82 = vector.load %arg5[%c2_36, %c0_37, %c0_38] : memref<4x128x128xbf16, #tpu.memory_space<vmem>>, vector<1x128x128xbf16>
    %83 = vector.shape_cast %82 : vector<1x128x128xbf16> to vector<128x128xbf16>
    %cst_39 = arith.constant dense<0.000000e+00> : vector<8x128xf32>
    %84 = tpu.matmul %71, %83, %cst_39 {dimension_numbers = #tpu.dot_dimension_numbers<[1], [0], [0], [1], [0, 0, 1, 1], [], []>} : vector<8x128xbf16>, vector<128x128xbf16>, vector<8x128xf32> -> vector<8x128xf32>
    %85 = arith.addf %81, %84 : vector<8x128xf32>
    %c3_40 = arith.constant 3 : index
    %c0_41 = arith.constant 0 : index
    %c0_42 = arith.constant 0 : index
    %86 = vector.load %arg5[%c3_40, %c0_41, %c0_42] : memref<4x128x128xbf16, #tpu.memory_space<vmem>>, vector<1x128x128xbf16>
    %87 = vector.shape_cast %86 : vector<1x128x128xbf16> to vector<128x128xbf16>
    %cst_43 = arith.constant dense<0.000000e+00> : vector<8x128xf32>
    %88 = tpu.matmul %74, %87, %cst_43 {dimension_numbers = #tpu.dot_dimension_numbers<[1], [0], [0], [1], [0, 0, 1, 1], [], []>} : vector<8x128xbf16>, vector<128x128xbf16>, vector<8x128xf32> -> vector<8x128xf32>
    %89 = arith.addf %85, %88 : vector<8x128xf32>
    %c0_44 = arith.constant 0 : index
    %c0_45 = arith.constant 0 : index
    %c0_46 = arith.constant 0 : index
    %90 = vector.load %arg6[%c0_44, %c0_45, %c0_46] : memref<2x8x128xf32, #tpu.memory_space<vmem>>, vector<1x8x128xf32>
    %91 = vector.shape_cast %90 : vector<1x8x128xf32> to vector<8x128xf32>
    %92 = arith.mulf %89, %91 : vector<8x128xf32>
    %cst_47 = arith.constant dense<0.000000e+00> : vector<8xf32>
    %93 = vector.multi_reduction <add>, %92, %cst_47 [1] : vector<8x128xf32> to vector<8xf32>
    %94 = vector.shape_cast %93 : vector<8xf32> to vector<8x1xf32>
    %cst_48 = arith.constant dense<0.000000e+00> : vector<1xf32>
    %95 = vector.multi_reduction <add>, %94, %cst_48 [0] : vector<8x1xf32> to vector<1xf32>
    %96 = vector.shape_cast %95 : vector<1xf32> to vector<1x1xf32>
    %c1_49 = arith.constant 1 : index
    %c0_50 = arith.constant 0 : index
    %c0_51 = arith.constant 0 : index
    %97 = vector.load %arg6[%c1_49, %c0_50, %c0_51] : memref<2x8x128xf32, #tpu.memory_space<vmem>>, vector<1x8x128xf32>
    %98 = vector.shape_cast %97 : vector<1x8x128xf32> to vector<8x128xf32>
    %99 = arith.mulf %89, %98 : vector<8x128xf32>
    %cst_52 = arith.constant dense<0.000000e+00> : vector<8xf32>
    %100 = vector.multi_reduction <add>, %99, %cst_52 [1] : vector<8x128xf32> to vector<8xf32>
    %101 = vector.shape_cast %100 : vector<8xf32> to vector<8x1xf32>
    %cst_53 = arith.constant dense<0.000000e+00> : vector<1xf32>
    %102 = vector.multi_reduction <add>, %101, %cst_53 [0] : vector<8x1xf32> to vector<1xf32>
    %103 = vector.shape_cast %102 : vector<1xf32> to vector<1x1xf32>
    %104 = vector.broadcast %96 : vector<1x1xf32> to vector<1x128xf32>
    %105 = arith.mulf %104, %6 : vector<1x128xf32>
    %106 = vector.broadcast %103 : vector<1x1xf32> to vector<1x128xf32>
    %107 = arith.mulf %106, %7 : vector<1x128xf32>
    %108 = arith.addf %105, %107 : vector<1x128xf32>
    %109 = arith.addf %108, %5 : vector<1x128xf32>
    %c0_54 = arith.constant 0 : index
    %c0_55 = arith.constant 0 : index
    %c0_56 = arith.constant 0 : index
    %110 = vector.load %arg8[%c0_54, %c0_55, %c0_56] : memref<1x1x128xf32, #tpu.memory_space<vmem>>, vector<1x1x128xf32>
    %111 = vector.shape_cast %110 : vector<1x1x128xf32> to vector<1x128xf32>
    %112 = vector.shape_cast %109 : vector<1x128xf32> to vector<1x1x128xf32>
    tpu.vector_store %arg8[%c0_54, %c0_55, %c0_56], %112 {strides = array<i32>} : memref<1x1x128xf32, #tpu.memory_space<vmem>>, vector<1x1x128xf32>,
    return
  }
  func.func @transform_0(%arg0: i32) -> (i32, i32, i32) {
    %c0_i32 = arith.constant 0 : i32
    %c0_i32_0 = arith.constant 0 : i32
    %c0_i32_1 = arith.constant 0 : i32
    return %arg0, %c0_i32, %c0_i32_0 : i32, i32, i32
  }
  func.func @transform_1(%arg0: i32) -> (i32, i32, i32) {
    %c0_i32 = arith.constant 0 : i32
    %c0_i32_0 = arith.constant 0 : i32
    %c0_i32_1 = arith.constant 0 : i32
    return %arg0, %c0_i32, %c0_i32_0 : i32, i32, i32
  }
  func.func @transform_2(%arg0: i32) -> (i32, i32) {
    %c0_i32 = arith.constant 0 : i32
    %c0_i32_0 = arith.constant 0 : i32
    %c0_i32_1 = arith.constant 0 : i32
    return %c0_i32, %c0_i32_0 : i32, i32
  }
  func.func @transform_3(%arg0: i32) -> (i32, i32) {
    %c0_i32 = arith.constant 0 : i32
    %c0_i32_0 = arith.constant 0 : i32
    %c0_i32_1 = arith.constant 0 : i32
    return %c0_i32, %c0_i32_0 : i32, i32
  }
  func.func @transform_4(%arg0: i32) -> (i32, i32, i32) {
    %c0_i32 = arith.constant 0 : i32
    %c0_i32_0 = arith.constant 0 : i32
    %c0_i32_1 = arith.constant 0 : i32
    %c0_i32_2 = arith.constant 0 : i32
    return %c0_i32, %c0_i32_0, %c0_i32_1 : i32, i32, i32
  }
  func.func @transform_5(%arg0: i32) -> (i32, i32, i32) {
    %c0_i32 = arith.constant 0 : i32
    %c0_i32_0 = arith.constant 0 : i32
    %c0_i32_1 = arith.constant 0 : i32
    %c0_i32_2 = arith.constant 0 : i32
    return %c0_i32, %c0_i32_0, %c0_i32_1 : i32, i32, i32
  }
  func.func @transform_6(%arg0: i32) -> (i32, i32) {
    %c0_i32 = arith.constant 0 : i32
    %c0_i32_0 = arith.constant 0 : i32
    %c0_i32_1 = arith.constant 0 : i32
    return %c0_i32, %c0_i32_0 : i32, i32
  }
  func.func @transform_7(%arg0: i32) -> (i32, i32, i32) {
    %c0_i32 = arith.constant 0 : i32
    %c0_i32_0 = arith.constant 0 : i32
    %c0_i32_1 = arith.constant 0 : i32
    return %arg0, %c0_i32, %c0_i32_0 : i32, i32, i32
  }
}

</mosaic_0001>

<bundles_post_ra>
// kernel: tpu_custom_call.1
= control target key start
LH: loop header
LB: loop body
LE: loop exit
PB: predicated region body
PF: predicated region fallthrough
CT: control target
= control target key end

     0   :  { %s1995_s0 = inlined_call_operand.hbm [shape: bf16[2,16,32], index: 0, kind: input, shape index: {}]   ;;  %s1996_s1 = inlined_call_operand.hbm [shape: bf16[2,8,32], index: 1, kind: input, shape index: {}]   ;;  %s1997_s2 = inlined_call_operand.hbm [shape: bf16[32,128], index: 2, kind: input, shape index: {}]   ;;  %s1998_s3 = inlined_call_operand.hbm [shape: bf16[32,128], index: 3, kind: input, shape index: {}]   ;;  %s1999_s4 = inlined_call_operand.hbm [shape: bf16[4,128,128], index: 4, kind: input, shape index: {}]   ;;  %s2000_s5 = inlined_call_operand.hbm [shape: f32[2,8,128], index: 5, kind: input, shape index: {}]   ;;  %s2001_s6 = inlined_call_operand.hbm [shape: f32[8,128], index: 6, kind: input, shape index: {}]   ;;  %s2002_s7 = inlined_call_operand.hbm [shape: f32[2,1,128], index: 7, kind: output, shape index: {}]  }
   0x1   :  { %2005 = sst [smem:[#allocation22_spill]] %s1997_s2 }
   0x2   :  { %2006 = sst [smem:[#allocation23_spill]] %s1998_s3 }
   0x3   :  { %2007 = sst [smem:[#allocation24_spill]] %s1999_s4 }
   0x4   :  { %2008 = sst [smem:[#allocation25_spill]] %s2000_s5 }
   0x5   :  { %2009 = sst [smem:[#allocation26_spill]] %s2001_s6 }
   0x6   :  { %12 = vsyncpa [#allocation3], 0 }
   0x7   :  { %14 = vsyncpa [#allocation3 + $0x1], 0 }
   0x8   :  { %15 = vsyncpa [#allocation6], 0 }
   0x9   :  { %17 = vsyncpa [#allocation6 + $0x1], 0 }
   0xa   :  { %18 = vsyncpa [#allocation9], 0 }
   0xb   :  { %19 = vsyncpa [#allocation12], 0 }
   0xc   :  { %20 = vsyncpa [#allocation4], 0 }
   0xd   :  { %22 = vsyncpa [#allocation4 + $0x1], 0  ;;  %s1761_s24 = smov 0   ;;  %s1763_s25 = smov 0  }
   0xe   :  { %s1765_s26 = smov 0   ;;  %s1767_s27 = smov 0  }
   0xf LB: > { %s2010_s2 = sld [smem:[#allocation22_spill]]  ;;  %s1785_s8 = sadd.s32 4294967295, %s1710_s27   ;;  %s1710_s27 = sphi %s1767_s27, %s2030_s27   ;;  %s1706_s26 = sphi %s1765_s26, %s2029_s26   ;;  %s1702_s25 = sphi %s1763_s25, %s2028_s25   ;;  %s1698_s24 = sphi %s1761_s24, %s2027_s24  }
  0x10   : > { %p1082_p0 = scmp.ge.s32.totalorder %s1710_s27, 1  ;;  %p49_p1 = scmp.eq.s32.totalorder %s1785_s8, 0 }
  0x11   : > { %p216_p2 = scmp.lt.s32.totalorder %s1710_s27, 3  ;;  %s1712_s10 = smov [#allocation7]  }
  0x12   : > { %s229_s11 = sshll.u32 %s1712_s10, 4  ;;  %s2012_s3 = sld [smem:[#allocation23_spill]]  ;;  %s230_s11 = int_to_ptr.vmem [resolvable:$true] %s229_s11 }
  0x13   : > { %p1790_p3 = pnand %p1082_p0, %p216_p2  ;;  %s2014_s5 = sld [smem:[#allocation25_spill]] }
  0x14   : > { %s1713_s19 = smov [#allocation8]   ;;  %s2003_s21 = smov 64  }
  0x15   : > { %s227_s30 = sshll.u32 %s2010_s2, 4  ;;  %p1319_p4 = pneg %p1790_p3  ;;  %s228_s30 = int_to_ptr.hbm [resolvable:$true] %s227_s30 }
  0x16   : > { %s243_s20 = sshll.u32 %s1713_s19, 4  ;;  %s2004_s22 = smov 4   ;;  %s244_s20 = int_to_ptr.vmem [resolvable:$true] %s243_s20 }
  0x17   : > { %p1802_p6 = pnand %p1319_p4, %p49_p1  ;;  %s1716_s23 = smov [#allocation11]  }
  0x18   : > { %s241_s14 = sshll.u32 %s2012_s3, 4  ;;  %s271_s28 = sshll.u32 %s1716_s23, 4  ;;  %s242_s14 = int_to_ptr.hbm [resolvable:$true] %s241_s14  ;;  %s272_s28 = int_to_ptr.vmem [resolvable:$true] %s271_s28 }
  0x19   : > { %s269_s18 = sshll.u32 %s2014_s5, 4  ;;  %s2015_s4 = sld [smem:[#allocation24_spill]]  ;;  %s270_s18 = int_to_ptr.hbm [resolvable:$true] %s269_s18 }
  0x1a   : > { %1322 = dma.hbm_to_vmem [thread:$0]  (!%p1802_p6), %s228_s30, 256, %s230_s11, [#allocation6], %s2003_s21, %s2003_s21, %s2004_s22  }
  0x1b   : > { %1325 = dma.hbm_to_vmem [thread:$0]  (!%p1802_p6), %s242_s14, 256, %s244_s20, [#allocation9], %s2003_s21, %s2003_s21, %s2004_s22  }
  0x1c   : > { %s1717_s13 = smov 128   ;;  %s1718_s30 = smov 8  }
  0x1d   : > { %1331 = dma.hbm_to_vmem [thread:$0]  (!%p1802_p6), %s270_s18, 256, %s272_s28, [#allocation12], %s1717_s13, %s1717_s13, %s1718_s30  }
  0x1e   : > { %s1719_s11 = smov [#allocation10]   ;;  %s2016_s6 = sld [smem:[#allocation26_spill]] }
  0x1f   : > { %s255_s12 = sshll.u32 %s2015_s4, 4  ;;  %s257_s14 = sshll.u32 %s1719_s11, 4  ;;  %s256_s12 = int_to_ptr.hbm [resolvable:$true] %s255_s12  ;;  %s258_s14 = int_to_ptr.vmem [resolvable:$true] %s257_s14 }
  0x20   : > { %1328 = dma.hbm_to_vmem [thread:$0]  (!%p1802_p6), %s256_s12, 4096, %s258_s14, [#allocation9], %s2003_s21, %s2003_s21, %s2004_s22  }
  0x21   : > { %s1720_s18 = smov [#allocation13]   ;;  %s1081_s23 = sadd.s32 4294967294, %s1710_s27  }
  0x22   : > { %s286_s20 = sshll.u32 %s1720_s18, 4  ;;  %s1836_s28 = sadd.s32 1, %s1710_s27   ;;  %s287_s20 = int_to_ptr.vmem [resolvable:$true] %s286_s20 }
  0x23   : > { %s35_s29 = sadd.s32 1, %s1706_s26  ;;  %s32_s10 = ssub.s32 %s1710_s27, %s1836_s28 }
  0x24   : > { %s284_s19 = sshll.u32 %s2016_s6, 4  ;;  %p42_p7 = scmp.ne.s32.totalorder %s1706_s26, %s1702_s25  ;;  %s285_s19 = int_to_ptr.hbm [resolvable:$true] %s284_s19 }
  0x25   : > { %1334 = dma.hbm_to_vmem [thread:$0]  (!%p1802_p6), %s285_s19, 128, %s287_s20, [#allocation12]  }
  0x26   : > { %p33_p8 = scmp.eq.s32.totalorder %s32_s10, 0  ;;  %p43_p9 = scmp.eq.s32.totalorder %s1710_s27, 0 }
  0x27   : > { %p48_p10 = scmp.ne.s32.totalorder %s1702_s25, %s1698_s24  ;;  %p203_p11 = scmp.eq.s32.totalorder %s1785_s8, 1 }
  0x28   : > { %s1848_s12 = scalar_select %p33_p8, %s1706_s26, %s35_s29  }
  0x29   : > { %p1850_p12 = por %p43_p9, %p42_p7  ;;  %p1856_p13 = por %p49_p1, %p48_p10 }
  0x2a   : > { %2017 = sst [smem:[#allocation21_spill]] %s1848_s12  ;;  %p1860_p0 = por %p203_p11, %p42_p7 }
  0x2b   : > { %p209_p2 = scmp.eq.s32.totalorder %s1081_s23, 1  ;;  %p1351_p4 = scmp.lt.s32.totalorder %s1710_s27, 2 }
  0x2c   : > { %s1866_s11 = sand.u32 1, %s1706_s26   ;;  %s1255_s17 = sshll.u32 %s1710_s27, 3 }
  0x2d   : > { %p1868_p6 = por %p209_p2, %p48_p10  ;;  %s1089_s16 = sshll.u32 %s1866_s11, 3 }
  0x2e   : > { %s306_s20 = scalar_lea.hbm %s1995_s0, %s1255_s17  ;;  %s301_s10 = scalar_lea.vmem [#allocation2], %s1089_s16 }
  0x2f   : > { %s307_s29 = sshll.u32 %s306_s20, 4  ;;  %s309_s21 = sshll.u32 %s301_s10, 4  ;;  %s308_s29 = int_to_ptr.hbm [resolvable:$true] %s307_s29  ;;  %s310_s21 = int_to_ptr.vmem [resolvable:$true] %s309_s21 }
  0x30   : > { %p1879_p7 = pnand %p1351_p4, %p1850_p12  ;;  %s319_s22 = sand.u32 1, %s1710_s27  }
  0x31   : > { %s1092_s2 = sshll.u32 %s1866_s11, 2  ;;  %s298_s3 = scalar_lea.sflag [#allocation3], %s1866_s11 }
  0x32   : > { %s1568_s4 = sshra.s32 %s308_s29, 4  ;;  %p1572_p9 = pneg %p1879_p7  ;;  %s1569_s4 = int_to_ptr.hbm [resolvable:$true] %s1568_s4 }
  0x33   : > { %s1570_s5 = scalar_lea.hbm %s1569_s4, 8  ;;  %s1575_s17 = scalar_lea.hbm %s1995_s0, 16 }
  0x34   : > { %p1571_p8 = scmp.ne.s32.totalorder %s1569_s4, %s1570_s5  ;;  %p1576_p12 = scmp.lt.s32.totalorder %s1569_s4, %s1995_s0 }
  0x35   : > { %p1577_p2 = scmp.lt.s32.totalorder %s1575_s17, %s1570_s5 }
  0x36   : > { %p1573_p10 = pnand %p1572_p9, %p1571_p8 }
  0x37   : > { %p1578_p4 = por %p1577_p2, %p1576_p12 }
  0x38   : > { %p1574_p11 = pneg %p1573_p10 }
  0x3a   : > { %p1579_p5 = pnand %p1578_p4, %p1574_p11 }
  0x3c   : > { %1582 = shalt.err (!%p1579_p5)
}
  0x3d   : > { %s2023_s11 = smov 4   ;;  %s2024_s20 = smov 64  }
  0x3e   : > { %1338 = dma.hbm_to_vmem [thread:$0]  (!%p1879_p7), %s308_s29, 128, %s310_s21, %s298_s3, %s2024_s20, %s2024_s20, %s2023_s11  }
  0x3f   : > { %s1093_s10 = sshll.u32 %s1710_s27, 2  ;;  %s323_s6 = scalar_lea.vmem [#allocation5], %s1092_s2 }
  0x40   : > { %s331_s13 = sshll.u32 %s323_s6, 4  ;;  %s327_s19 = scalar_lea.hbm %s1996_s1, %s1093_s10  ;;  %s332_s13 = int_to_ptr.vmem [resolvable:$true] %s331_s13 }
  0x41   : > { %s329_s4 = sshll.u32 %s327_s19, 4  ;;  %s320_s5 = scalar_lea.sflag [#allocation6], %s319_s22  ;;  %s330_s4 = int_to_ptr.hbm [resolvable:$true] %s329_s4 }
  0x42   : > { %s1598_s17 = sshra.s32 %s330_s4, 4  ;;  %s1605_s2 = scalar_lea.hbm %s1996_s1, 8  ;;  %s1599_s17 = int_to_ptr.hbm [resolvable:$true] %s1598_s17 }
  0x43   : > { %s1600_s18 = scalar_lea.hbm %s1599_s17, 4  ;;  %p1606_p11 = scmp.lt.s32.totalorder %s1599_s17, %s1996_s1 }
  0x44   : > { %p1601_p5 = scmp.ne.s32.totalorder %s1599_s17, %s1600_s18  ;;  %p1607_p12 = scmp.lt.s32.totalorder %s1605_s2, %s1600_s18 }
  0x46   : > { %p1603_p8 = pnand %p1601_p5, %p1572_p9  ;;  %p1608_p2 = por %p1607_p12, %p1606_p11 }
  0x48   : > { %p1604_p10 = pneg %p1603_p8 }
  0x4a   : > { %p1609_p4 = pnand %p1608_p2, %p1604_p10 }
  0x4c   : > { %1612 = shalt.err (!%p1609_p4)
}
  0x4d   : > { %1341 = dma.hbm_to_vmem [thread:$0]  (!%p1879_p7), %s330_s4, 64, %s332_s13, %s320_s5  }
  0x4e   : > { %340 = sbr.rel (%p1790_p3) target bundleno = 1055 (0x41f), region = 48  ;;  %s1920_s22 = sand.u32 (!%p1790_p3), 1, %s1702_s25  }
  0x4f   : > { %s1095_s12 = sshll.u32 (!%p1790_p3), %s1920_s22, 3  ;;  %s343_s11 = scalar_lea.sflag (!%p1790_p3), [#allocation3], %s1920_s22 }
  0x50   : > { %s346_s20 = scalar_lea.vmem (!%p1790_p3), [#allocation2], %s1095_s12 }
  0x53   : > { %1673 = dma.done.wait (%p1856_p13), %s343_s11, 128  }
  0x54   : > { %1675 = vsyncadd (%p1856_p13), %s343_s11, 4294967168  ;;  %s352_s23 = sand.u32 1, %s1785_s8   ;;  %s1096_s9 = sshll.u32 %s1920_s22, 2 }
  0x55   : > { %s353_s10 = scalar_lea.sflag [#allocation6], %s352_s23  ;;  %s356_s13 = scalar_lea.vmem [#allocation5], %s1096_s9 }
  0x56   : > { %1677 = dma.done.wait (%p1856_p13), %s353_s10, 64  }
  0x57   : > { %1679 = vsyncadd (%p1856_p13), %s353_s10, 4294967232 }
  0x58   : > { %1681 = dma.done.wait (%p49_p1), [#allocation6], 256  }
  0x59   : > { %1683 = vsyncadd (%p49_p1), [#allocation6], 4294967040 }
  0x5a   : > { %1685 = dma.done.wait (%p49_p1), [#allocation9], 4352  }
  0x5b   : > { %1687 = vsyncadd (%p49_p1), [#allocation9], 4294962944 }
  0x5c   : > { %1689 = dma.done.wait (%p49_p1), [#allocation12], 384  }
  0x5d   : > { %1691 = vsyncadd (%p49_p1), [#allocation12], 4294966912  ;;  %v1258_v0 = vld [vmem:[#allocation7 + $0x8] sm:$0xff]  ;;  %v1260_v1 = vld [vmem:[#allocation8 + $0x8] sm:$0xff]  ;;  %vm450_vm0 = vcmask 261120   ;;  %v529_v37 = vlaneseq  ;;  %vm535_vm2 = vcmask 130048   ;;  %s941_s19 = scalar_lea.hbm %s2002_s7, %s1785_s8 }
  0x5e   : > { %460 = vmatpush.bf16.msra.mxu0 %v1258_v0  ;;  %497 = vmatpush.bf16.msra.mxu1 %v1260_v1  ;;  %v1257_v2 = vld [vmem:[#allocation7] sm:$0xff]  ;;  %v1259_v3 = vld [vmem:[#allocation8] sm:$0xff]  ;;  %v1268_v4 = vld [vmem:[#allocation10 + $0x38] sm:$0xff]  ;;  %s416_s4 = scalar_lea.vmem [#allocation14], %s1920_s22  ;;  %s945_s17 = sshll.u32 %s941_s19, 4  ;;  %s946_s17 = int_to_ptr.hbm [resolvable:$true] %s945_s17 }
  0x5f   : > { %v1256_v5 = vld [vmem:[%s346_s20] sm:$0xff]  ;;  %v470_v6 = vld [vmem:[%s356_s13] sm:$0xf]  ;;  %v1265_v9 = vld [vmem:[#allocation10 + $0x20] sm:$0xff]  ;;  %v530_v38 = vand.u32 127, %v529_v37  ;;  %s943_s5 = sshll.u32 %s416_s4, 4  ;;  %s944_s5 = int_to_ptr.vmem [resolvable:$true] %s943_s5 }
  0x60   : > { %v1267_v7 = vld [vmem:[#allocation10 + $0x30] sm:$0xff]  ;;  %v1266_v8 = vld [vmem:[#allocation10 + $0x28] sm:$0xff]  ;;  %v1264_v10 = vld [vmem:[#allocation10 + $0x18] sm:$0xff]  ;;  %s933_s18 = scalar_lea.sflag [#allocation4], %s1920_s22  ;;  %s1642_s3 = sshra.s32 %s946_s17, 4  ;;  %s1643_s3 = int_to_ptr.hbm [resolvable:$true] %s1642_s3 }
  0x61   : > { %v1263_v11 = vld [vmem:[#allocation10 + $0x10] sm:$0xff]  ;;  %v1262_v12 = vld [vmem:[#allocation10 + $0x8] sm:$0xff]  ;;  %v1261_v13 = vld [vmem:[#allocation10] sm:$0xff]  ;;  %vm531_vm1 = vcmp.lt.s32.totalorder %v530_v38, 8  ;;  %s1644_s21 = scalar_lea.hbm %s1643_s3, 1  ;;  %s1648_s6 = scalar_lea.hbm %s2002_s7, 2 }
  0x62   : > { %461 = vmatpush.bf16.msra.mxu0 %v1257_v2  ;;  %498 = vmatpush.bf16.msra.mxu1 %v1259_v3  ;;  %v1400_v14 = vld [vmem:[#allocation13 + $0x1] ss:$0 sm:$0xff]  ;;  %v1399_v18 = vld [vmem:[#allocation13] ss:$0 sm:$0xff]  ;;  %v1401_v20 = vld [vmem:[#allocation13 + $0x4] ss:$0 sm:$0xff]  ;;  %p1645_p1 = scmp.ne.s32.totalorder %s1643_s3, %s1644_s21  ;;  %p1649_p7 = scmp.lt.s32.totalorder %s1643_s3, %s2002_s7 }
  0x63   : > { %v1402_v27 = vld [vmem:[#allocation13 + $0x3] ss:$0 sm:$0xff]  ;;  %v1403_v29 = vld [vmem:[#allocation13 + $0x2] ss:$0 sm:$0xff]  ;;  %v1292_v45 = vld [vmem:[#allocation10 + $0xf8] sm:$0xff]  ;;  %p1650_p9 = scmp.lt.s32.totalorder %s1648_s6, %s1644_s21 }
  0x64   : > { %v1291_v47 = vld [vmem:[#allocation10 + $0xf0] sm:$0xff]  ;;  %v1290_v52 = vld [vmem:[#allocation10 + $0xe8] sm:$0xff]  ;;  %v1289_v55 = vld [vmem:[#allocation10 + $0xe0] sm:$0xff]  ;;  %p1646_p3 = pnand %p1645_p1, %p1860_p0 }
  0x65   : > { %1114 = vmatmul.msk.bf16.vlgmr.msra.gmra.mxu0 %vm450_vm0, %v1256_v5  ;;  %1123 = vmatmul.msk.bf16.vlgmr.msra.gmra.mxu1 %vm450_vm0, %v470_v6  ;;  %v1288_v60 = vld [vmem:[#allocation10 + $0xd8] sm:$0xff]  ;;  %v1287_v63 = vld [vmem:[#allocation10 + $0xd0] sm:$0xff]  ;;  %v1286_v0 = vld [vmem:[#allocation10 + $0xc8] sm:$0xff]  ;;  %p1651_p5 = por %p1650_p9, %p1649_p7 }
  0x66   : > { %735 = vmatpush.bf16.msrb.mxu0 %v1268_v4  ;;  %v1285_v3 = vld [vmem:[#allocation10 + $0xc0] sm:$0xff]  ;;  %v1279_v37 = vld [vmem:[#allocation10 + $0x90] sm:$0xff]  ;;  %v1270_v38 = vld [vmem:[#allocation10 + $0x48] sm:$0xff]  ;;  %p1647_p13 = pneg %p1646_p3 }
  0x68   : > { %p1652_p8 = pnand %p1651_p5, %p1647_p13 }
  0x6a   : > { %736 = vmatpush.bf16.msrb.mxu0 %v1267_v7 }
  0x6e   : > { %737 = vmatpush.bf16.msrb.mxu0 %v1266_v8 }
  0x72   : > { %738 = vmatpush.bf16.msrb.mxu0 %v1265_v9 }
  0x76   : > { %739 = vmatpush.bf16.msrb.mxu0 %v1264_v10 }
  0x7a   : > { %740 = vmatpush.bf16.msrb.mxu0 %v1263_v11 }
  0x7e   : > { %741 = vmatpush.bf16.msrb.mxu0 %v1262_v12 }
  0x82   : > { %742 = vmatpush.bf16.msrb.mxu0 %v1261_v13 }
  0xe2   : > { %v463_v15 = vpop.f32.mrf.mxu0  ;;  %v500_v16 = vpop.f32.mrf.mxu1 }
  0xe3   : > { %v501_v17 = vadd.f32 %v1400_v14, %v500_v16  ;;  %v464_v19 = vadd.f32 %v1399_v18, %v463_v15 }
  0xe5   : > { %1404 = vtanh.f32 %v501_v17 }
  0xe6   : > { %1406 = vtanh.f32 %v464_v19 }
  0xea   : > { %v465_v21 = vpop.f32.mrf.mxu0  ;;  %v502_v22 = vpop.f32.mrf.mxu1 }
  0xeb   : > { %v466_v23 = vadd.f32 %v1399_v18, %v465_v21  ;;  %v1946_v24 = vpop.eup %1404 }
  0xec   : > { %v506_v25 = vpack.c.bf16 %v1946_v24, %v1946_v24  ;;  %v513_v26 = vmul.f32 %v1946_v24, %v1401_v20  ;;  %v508_v28 = vmul.f32 %v1946_v24, %v1402_v27  ;;  %v1407_v30 = vpop.eup %1406  ;;  %v1275_v27 = vld [vmem:[#allocation10 + $0x70] sm:$0xff] }
  0xed   : > { %1408 = vtanh.f32 %v466_v23 }
  0xee   : > { %743 = vmatmul.bf16.vlgmr.msrb.gmra.mxu0 %v506_v25  ;;  %514 = vadd.xlane.f32.xlu0 %v513_v26  ;;  %v510_v33 = vadd.f32 %v1403_v29, %v508_v28  ;;  %v1276_v25 = vld [vmem:[#allocation10 + $0x78] sm:$0xff]  ;;  %v1283_v28 = vld [vmem:[#allocation10 + $0xb0] sm:$0xff]  ;;  %v1274_v29 = vld [vmem:[#allocation10 + $0x68] sm:$0xff] }
  0xef   : > { %v1284_v26 = vld [vmem:[#allocation10 + $0xb8] sm:$0xff] }
  0xf0   : > { %v511_v34 = vpack.c.bf16 %v510_v33, %v510_v33  ;;  %813 = vmatpush.bf16.msrb.mxu1 %v1284_v26  ;;  %v1272_v33 = vld [vmem:[#allocation10 + $0x58] sm:$0xff] }
  0xf3   : > { %v1409_v31 = vpop.eup %1408 }
  0xf4   : > { %v505_v32 = vpack.c.bf16 %v1409_v31, %v1407_v30  ;;  %814 = vmatpush.bf16.msrb.mxu1 %v1283_v28  ;;  %v1282_v30 = vld [vmem:[#allocation10 + $0xa8] sm:$0xff]  ;;  %v1273_v31 = vld [vmem:[#allocation10 + $0x60] sm:$0xff] }
  0xf6   : > { %523 = vmatpush.bf16.xpose.msra.mxu2 %v505_v32  ;;  %558 = vmatpush.bf16.msra.mxu3 %v505_v32  ;;  %v1281_v32 = vld [vmem:[#allocation10 + $0xa0] sm:$0xff] }
  0xf8   : > { %815 = vmatpush.bf16.msrb.mxu1 %v1282_v30 }
  0xfa   : > { %674 = vmatpush.bf16.msrb.mxu3 %v1276_v25 }
  0xfc   : > { %816 = vmatpush.bf16.msrb.mxu1 %v1281_v32 }
  0xfd   : > { %524 = vmatmul.bf16.vlgmr.msra.gmra.mxu2 %v511_v34  ;;  %v1280_v34 = vld [vmem:[#allocation10 + $0x98] sm:$0xff] }
  0xfe   : > { %892 = vmatpush.bf16.msrb.mxu2 %v1292_v45  ;;  %675 = vmatpush.bf16.msrb.mxu3 %v1275_v27 }
 0x100   : > { %817 = vmatpush.bf16.msrb.mxu1 %v1280_v34 }
 0x102   : > { %893 = vmatpush.bf16.msrb.mxu2 %v1291_v47  ;;  %676 = vmatpush.bf16.msrb.mxu3 %v1274_v29 }
 0x104   : > { %818 = vmatpush.bf16.msrb.mxu1 %v1279_v37 }
 0x106   : > { %894 = vmatpush.bf16.msrb.mxu2 %v1290_v52  ;;  %677 = vmatpush.bf16.msrb.mxu3 %v1273_v31 }
 0x10a   : > { %895 = vmatpush.bf16.msrb.mxu2 %v1289_v55  ;;  %678 = vmatpush.bf16.msrb.mxu3 %v1272_v33  ;;  %v906_v55 = vld [vmem:[#allocation11] sm:$0xff] }
 0x10e   : > { %896 = vmatpush.bf16.msrb.mxu2 %v1288_v60 }
 0x112   : > { %897 = vmatpush.bf16.msrb.mxu2 %v1287_v63 }
 0x116   : > { %898 = vmatpush.bf16.msrb.mxu2 %v1286_v0 }
 0x11a   : > { %899 = vmatpush.bf16.msrb.mxu2 %v1285_v3 }
 0x161   : > { %v515_v39 = vpop.xlane.xlu0 %514 }
 0x16b   : > { %v1952_v35 = vpop.f32.mrf.mxu0 }
 0x173   : > { %v746_v36 = vpop.f32.mrf.mxu0 }
 0x174   : > { %v1271_v36 = vld [vmem:[#allocation10 + $0x50] sm:$0xff] }
 0x175   : > { %679 = vmatpush.bf16.msrb.mxu3 %v1271_v36 }
 0x179   : > { %680 = vmatpush.bf16.msrb.mxu3 %v1270_v38 }
 0x180   : > { %v525_v40 = vpop.f32.mrf.mxu2 }
 0x181   : > { %v526_v41 = vadd.f32 %v525_v40, %v515_v39  ;;  %v1278_v39 = vld [vmem:[#allocation10 + $0x88] sm:$0xff] }
 0x182   : > { %819 = vmatpush.bf16.msrb.mxu1 %v1278_v39 }
 0x183   : > { %v534_v42 = vsel %vm531_vm1, %v526_v41, -1e+30 }
 0x184   : > { %v536_v43 = vsel %vm535_vm2, %v534_v42, -inf }
 0x185   : > { %537 = vmax.xlane.f32.xlu0 %v536_v43  ;;  %v1277_v43 = vld [vmem:[#allocation10 + $0x80] sm:$0xff] }
 0x186   : > { %820 = vmatpush.bf16.msrb.mxu1 %v1277_v43 }
 0x188   : > { %v527_v44 = vpop.f32.mrf.mxu2 }
 0x1f8   : > { %v538_v46 = vpop.xlane.xlu0 %537 }
 0x1f9   : > { %v539_v48 = vsub.f32 %v534_v42, %v538_v46  ;;  %v564_v49 = vrot.slane %v538_v46, 4  ;;  %v1269_v42 = vld [vmem:[#allocation10 + $0x40] sm:$0xff] }
 0x1fa   : > { %681 = vmatpush.bf16.msrb.mxu3 %v1269_v42 }
 0x1fb   : > { %v540_v50 = vmul.f32 1.442695, %v539_v48  ;;  %v565_v51 = vmax.f32 %v538_v46, %v564_v49 }
 0x1fd   : > { %1410 = vpow2.f32 %v540_v50  ;;  %v566_v53 = vrot.slane %v565_v51, 2 }
 0x1ff   : > { %v567_v54 = vmax.f32 %v565_v51, %v566_v53 }
 0x201   : > { %v568_v56 = vrot.slane %v567_v54, 1 }
 0x203   : > { %v1411_v57 = vpop.eup %1410  ;;  %v569_v58 = vmax.f32 %v567_v54, %v568_v56  ;;  %v917_v54 = vld [vmem:[#allocation11 + $0x8] sm:$0xff] }
 0x204   : > { %v542_v59 = vsel %vm535_vm2, %v1411_v57, 0.0 }
 0x205   : > { %v570_v61 = vsub.f32 %v538_v46, %v569_v58  ;;  %543 = vadd.xlane.f32.xlu1 %v542_v59 }
 0x207   : > { %v571_v62 = vmul.f32 1.442695, %v570_v61 }
 0x209   : > { %1412 = vpow2.f32 %v571_v62 }
 0x20f   : > { %v1413_v1 = vpop.eup %1412 }
 0x210   : > { %v573_v2 = vrot.slane %v1413_v1, 4 }
 0x212   : > { %v574_v4 = vadd.f32 %v1413_v1, %v573_v2 }
 0x214   : > { %v575_v5 = vrot.slane %v574_v4, 2 }
 0x216   : > { %v576_v6 = vadd.f32 %v575_v5, %v574_v4 }
 0x218   : > { %v577_v7 = vrot.slane %v576_v6, 1 }
 0x21a   : > { %v578_v8 = vadd.f32 %v577_v7, %v576_v6  ;;  %v425_v6 = vld [vmem:[#allocation13 + $0x7] sm:$0x1]  ;;  %v424_v7 = vld [vmem:[#allocation13 + $0x6] sm:$0x1] }
 0x21c   : > { %1414 = vrcp.f32 %v578_v8 }
 0x222   : > { %v1415_v9 = vpop.eup %1414 }
 0x223   : > { %v580_v10 = vmul.f32 %v1415_v9, %v1413_v1 }
 0x225   : > { %v581_v11 = vmul.f32 %v1946_v24, %v580_v10 }
 0x227   : > { %v582_v12 = vrot.slane %v581_v11, 4 }
 0x229   : > { %v583_v13 = vadd.f32 %v582_v12, %v581_v11  ;;  %v423_v12 = vld [vmem:[#allocation13 + $0x5] sm:$0x1] }
 0x22b   : > { %v584_v14 = vrot.slane %v583_v13, 2 }
 0x22d   : > { %v585_v15 = vadd.f32 %v584_v14, %v583_v13 }
 0x22f   : > { %v586_v16 = vrot.slane %v585_v15, 1 }
 0x231   : > { %v587_v17 = vadd.f32 %v586_v16, %v585_v15 }
 0x233   : > { %v591_v18 = vmul.f32 %v1946_v24, %v587_v17 }
 0x235   : > { %v592_v19 = vpack.c.bf16 %v591_v18, %v591_v18 }
 0x237   : > { %900 = vmatmul.bf16.vlgmr.msrb.gmra.mxu2 %v592_v19 }
 0x278   : > { %v544_v20 = vpop.xlane.xlu1 %543 }
 0x279   : > { %1416 = vrcp.f32 %v544_v20 }
 0x27f   : > { %v1417_v21 = vpop.eup %1416 }
 0x280   : > { %v546_v22 = vmul.f32 %v1417_v21, %v1411_v57 }
 0x282   : > { %v547_v23 = vpack.c.bf16 %v546_v22, %v546_v22 }
 0x284   : > { %1124 = vmatmul.msk.bf16.vlgmr.msra.gmra.mxu3 %vm535_vm2, %v547_v23 }
 0x2ba   : > { %v901_v40 = vpop.f32.mrf.mxu2 }
 0x2c2   : > { %v903_v41 = vpop.f32.mrf.mxu2 }
 0x307   : > { %v560_v44 = vpop.f32.mrf.mxu3 }
 0x308   : > { %v588_v45 = vpack.c.bf16 %v560_v44, %v560_v44  ;;  %v589_v46 = vmul.f32 %v1946_v24, %v560_v44 }
 0x30a   : > { %v590_v47 = vpack.c.bf16 %v589_v46, %v589_v46  ;;  %682 = vmatmul.bf16.vlgmr.msrb.gmra.mxu3 %v588_v45 }
 0x30c   : > { %821 = vmatmul.bf16.vlgmr.msrb.gmra.mxu1 %v590_v47 }
 0x30f   : > { %v562_v48 = vpop.f32.mrf.mxu3 }
 0x389   : > { %v822_v49 = vpop.f32.mrf.mxu1 }
 0x38d   : > { %v683_v50 = vpop.f32.mrf.mxu3 }
 0x38e   : > { %v745_v51 = vadd.f32 %v1952_v35, %v683_v50 }
 0x390   : > { %v826_v52 = vadd.f32 %v822_v49, %v745_v51 }
 0x391   : > { %v824_v53 = vpop.f32.mrf.mxu1 }
 0x392   : > { %v905_v56 = vadd.f32 %v901_v40, %v826_v52 }
 0x394   : > { %v918_v57 = vmul.f32 %v917_v54, %v905_v56  ;;  %v907_v58 = vmul.f32 %v906_v55, %v905_v56 }
 0x395   : > { %v685_v59 = vpop.f32.mrf.mxu3 }
 0x396   : > { %919 = vadd.xlane.f32.xlu2 %v918_v57  ;;  %908 = vadd.xlane.f32.xlu1 %v907_v58 }
 0x409   : > { %v920_v60 = vpop.xlane.xlu2 %919  ;;  %v909_v24 = vpop.xlane.xlu1 %908 }
 0x40a   : > { %v921_v61 = vrot.slane %v920_v60, 4  ;;  %v910_v62 = vrot.slane %v909_v24, 4 }
 0x40c   : > { %v922_v63 = vadd.f32 %v921_v61, %v920_v60  ;;  %v911_v0 = vadd.f32 %v910_v62, %v909_v24 }
 0x40e   : > { %v923_v1 = vrot.slane %v922_v63, 2  ;;  %v912_v35 = vrot.slane %v911_v0, 2 }
 0x410   : > { %v924_v2 = vadd.f32 %v923_v1, %v922_v63  ;;  %v913_v3 = vadd.f32 %v912_v35, %v911_v0 }
 0x412   : > { %v925_v4 = vrot.slane %v924_v2, 1  ;;  %v914_v5 = vrot.slane %v913_v3, 1 }
 0x414   : > { %v926_v8 = vadd.f32 %v925_v4, %v924_v2  ;;  %v915_v9 = vadd.f32 %v914_v5, %v913_v3 }
 0x416   : > { %v928_v10 = vmul.f32 %v926_v8, %v425_v6  ;;  %v927_v11 = vmul.f32 %v915_v9, %v424_v7 }
 0x418   : > { %v929_v13 = vadd.f32 %v928_v10, %v927_v11 }
 0x41a   : > { %v930_v14 = vadd.f32 %v929_v13, %v423_v12 }
 0x41c   : > { %931 = vst [vmem:[%s416_s4] sm:$0x1] %v930_v14 }
 0x41d   : > { %1655 = shalt.err (!%p1652_p8)
}
 0x41e   : > { %1317 = dma.vmem_to_hbm [thread:$0]  (%p1860_p0), %s944_s5, 16, %s946_s17, %s933_s18  }
 0x41f PF: > { %s957_s22 = sand.u32 1, %s1698_s24   ;;  %p2025_p10 = scmp.ge.s32.totalorder %s1710_s27, 2 }
 0x420   : > { %s958_s11 = scalar_lea.sflag [#allocation4], %s957_s22 }
 0x421   : > { %p1343_p11 = pnand %p2025_p10, %p1868_p6 }
 0x423   : > { %p1344_p12 = pneg %p1343_p11 }
 0x425   : > { %1693 = dma.done.wait (%p1344_p12), %s958_s11, 16  }
 0x426   : > { %1695 = vsyncadd (%p1344_p12), %s958_s11, 4294967280  ;;  %s2026_s20 = sld [smem:[#allocation21_spill]]  ;;  %p25_p2 = scmp.ge.s32.totalorder %s1836_s28, 4  }
 0x427   : > { %s2027_s24 = smov %s1702_s25  ;;  %s2028_s25 = smov %s1706_s26 }
 0x428   : > { %s2030_s27 = smov %s1836_s28  ;;  %27 = sbr.rel (!%p25_p2) target bundleno = 15 (0xf), region = 130 }
 0x42c   : > { %s2029_s26 = smov %s2026_s20 }
 0x42d   :  { %963 = vsyncpa [#allocation3], 1 }
 0x42e   :  { %965 = vsyncpa [#allocation3 + $0x1], 1 }
 0x42f   :  { %966 = vsyncpa [#allocation6], 1 }
 0x430   :  { %968 = vsyncpa [#allocation6 + $0x1], 1 }
 0x431   :  { %969 = vsyncpa [#allocation9], 1 }
 0x432   :  { %970 = vsyncpa [#allocation12], 1 }
 0x433   :  { %971 = vsyncpa [#allocation4], 1 }
 0x434   :  { %973 = vsyncpa [#allocation4 + $0x1], 1 }

</bundles_post_ra>
